<compile_context>
chip_gen: v5e
topology: v5e:2x2
jax: 0.10.0
libtpu: 0.0.40
codegen_flags: <defaults>
</compile_context>

<pallas_src>
import functools

import jax
import jax.numpy as jnp
from jax.experimental import pallas as pl
from jax.experimental.pallas import tpu as pltpu


# ---------------------------------------------------------------------------
# Small path: all three (B, D) arrays fit comfortably in VMEM -> one fused
# kernel, grid = 1 (per-grid-step pipeline overhead would dominate here).
# ---------------------------------------------------------------------------
def _triplet_small_kernel(a_ref, p_ref, n_ref, out_ref, *, margin):
    a = a_ref[...]
    p = p_ref[...]
    n = n_ref[...]
    b = a.shape[0]
    eps = jnp.float32(1e-6)

    # Hard-negative mining on the *squared* distance (same argmin, no sqrt).
    dn = a - n
    d2 = jnp.sum(dn * dn, axis=1, keepdims=True)                       # (B, 1)
    rows = jax.lax.broadcasted_iota(jnp.int32, (b, 1), 0)              # (B, 1)
    min_val = jnp.min(d2)
    # first-occurrence argmin (equality on the same array is exact)
    idx = jnp.min(jnp.where(d2 == min_val, rows, jnp.int32(2 ** 30)))

    # Direct dynamic row read (replaces the old one-hot masked gather).
    hn = n_ref[pl.ds(idx, 1), :]                                       # (1, D)

    dap = a - p + eps
    d_ap = jnp.sqrt(jnp.sum(dap * dap, axis=1, keepdims=True))         # (B, 1)
    dan = a - hn + eps
    d_an = jnp.sqrt(jnp.sum(dan * dan, axis=1, keepdims=True))         # (B, 1)

    hinge = jnp.maximum(d_ap - d_an + jnp.float32(margin), 0.0)
    out_ref[0, 0] = jnp.sum(hinge) / jnp.float32(b)


def _triplet_loss_small(anchor, positive, negative, margin):
    kernel = functools.partial(_triplet_small_kernel, margin=margin)
    out = pl.pallas_call(
        kernel,
        out_shape=jax.ShapeDtypeStruct((1, 1), jnp.float32),
        in_specs=[pl.BlockSpec(memory_space=pltpu.MemorySpace.VMEM)] * 3,
        out_specs=pl.BlockSpec(memory_space=pltpu.MemorySpace.SMEM),
    )(anchor, positive, negative)
    return out[0, 0]


# ---------------------------------------------------------------------------
# Tiled path, pass 1: hardest-negative mining over batch tiles.
# Carries the running min in a (1,1) VMEM scratch and the current winning
# negative row in a (1, D) VMEM scratch; writes the final row on the last tile.
# ---------------------------------------------------------------------------
def _mine_kernel(a_ref, n_ref, hn_out_ref, minval_ref, hn_buf_ref, *,
                 b_true, tile_b):
    t = pl.program_id(0)

    @pl.when(t == 0)
    def _init():
        minval_ref[...] = jnp.full((1, 1), jnp.inf, dtype=jnp.float32)

    a = a_ref[...]
    n = n_ref[...]
    d = a - n
    d2 = jnp.sum(d * d, axis=1, keepdims=True)                         # (tile_b, 1)
    local_rows = jax.lax.broadcasted_iota(jnp.int32, (tile_b, 1), 0)
    valid = (local_rows + t * tile_b) < b_true                          # mask padded rows
    d2 = jnp.where(valid, d2, jnp.float32(jnp.inf))

    local_min = jnp.min(d2, axis=0, keepdims=True)                      # (1, 1)
    # first-occurrence offset of the tile-local minimum
    local_off = jnp.min(jnp.where(d2 == local_min, local_rows,
                                  jnp.int32(2 ** 30)))

    new_row = n_ref[pl.ds(local_off, 1), :]                              # (1, D)
    prev_min = minval_ref[...]                                           # (1, 1)
    take = local_min < prev_min              # strict '<': earlier tile wins ties
    minval_ref[...] = jnp.minimum(local_min, prev_min)
    hn_buf_ref[...] = jnp.where(take, new_row, hn_buf_ref[...])

    @pl.when(t == pl.num_programs(0) - 1)
    def _finalize():
        hn_out_ref[...] = hn_buf_ref[...]


# ---------------------------------------------------------------------------
# Tiled path, pass 2: hinge loss over (anchor, positive) tiles against the
# (1, D) hardest negative; partial sums accumulated in a (1,1) VMEM scratch.
# ---------------------------------------------------------------------------
def _loss_kernel(a_ref, p_ref, hn_ref, out_ref, acc_ref, *,
                 b_true, tile_b, margin):
    i = pl.program_id(0)

    @pl.when(i == 0)
    def _init():
        acc_ref[...] = jnp.zeros((1, 1), jnp.float32)

    eps = jnp.float32(1e-6)
    a = a_ref[...]
    p = p_ref[...]
    hn = hn_ref[...]                                                    # (1, D)

    dap = a - p + eps
    d_ap = jnp.sqrt(jnp.sum(dap * dap, axis=1, keepdims=True))          # (tile_b, 1)
    dan = a - hn + eps
    d_an = jnp.sqrt(jnp.sum(dan * dan, axis=1, keepdims=True))          # (tile_b, 1)

    hinge = jnp.maximum(d_ap - d_an + jnp.float32(margin), 0.0)
    rows = jax.lax.broadcasted_iota(jnp.int32, (tile_b, 1), 0) + i * tile_b
    hinge = jnp.where(rows < b_true, hinge, 0.0)                        # mask padding
    acc_ref[...] += jnp.sum(hinge, axis=0, keepdims=True)

    @pl.when(i == pl.num_programs(0) - 1)
    def _finalize():
        out_ref[...] = acc_ref[...] / jnp.float32(b_true)


def _choose_tile_b(b, d):
    # Keep each input tile <= ~2 MiB so (2 inputs x 2 pipeline buffers) stays
    # well under v5e's 16 MiB default scoped VMEM and v7x's 64 MiB physical.
    target_bytes = 2 * 1024 * 1024
    tb = target_bytes // (4 * d)
    tb = max(8, (tb // 8) * 8)
    tb = min(tb, max(8, ((b + 7) // 8) * 8))
    return tb


def _triplet_loss_tiled(anchor, positive, negative, margin=1.0, tile_b=None):
    B, D = anchor.shape
    if tile_b is None:
        tile_b = _choose_tile_b(B, D)
    tile_b = max(8, (tile_b // 8) * 8)
    num_tiles = pl.cdiv(B, tile_b)
    b_pad = num_tiles * tile_b

    a, p, n = anchor, positive, negative
    if b_pad != B:
        pad = ((0, b_pad - B), (0, 0))
        a = jnp.pad(a, pad)
        p = jnp.pad(p, pad)
        n = jnp.pad(n, pad)

    # Pass 1: hardest-negative mining -> hn row, shape (1, D).
    hn = pl.pallas_call(
        functools.partial(_mine_kernel, b_true=B, tile_b=tile_b),
        out_shape=jax.ShapeDtypeStruct((1, D), jnp.float32),
        grid_spec=pltpu.PrefetchScalarGridSpec(
            num_scalar_prefetch=0,
            grid=(num_tiles,),
            in_specs=[pl.BlockSpec((tile_b, D), lambda i: (i, 0)),
                      pl.BlockSpec((tile_b, D), lambda i: (i, 0))],
            out_specs=pl.BlockSpec(memory_space=pltpu.MemorySpace.VMEM),
            scratch_shapes=[pltpu.VMEM((1, 1), jnp.float32),
                            pltpu.VMEM((1, D), jnp.float32)],
        ),
        compiler_params=pltpu.CompilerParams(
            dimension_semantics=("arbitrary",)),
    )(a, n)

    # Pass 2: hinge loss against the hardest negative, mean over the true batch.
    out = pl.pallas_call(
        functools.partial(_loss_kernel, b_true=B, tile_b=tile_b, margin=margin),
        out_shape=jax.ShapeDtypeStruct((1, 1), jnp.float32),
        grid_spec=pltpu.PrefetchScalarGridSpec(
            num_scalar_prefetch=0,
            grid=(num_tiles,),
            in_specs=[pl.BlockSpec((tile_b, D), lambda i: (i, 0)),
                      pl.BlockSpec((tile_b, D), lambda i: (i, 0)),
                      pl.BlockSpec(memory_space=pltpu.MemorySpace.VMEM)],
            out_specs=pl.BlockSpec(memory_space=pltpu.MemorySpace.VMEM),
            scratch_shapes=[pltpu.VMEM((1, 1), jnp.float32)],
        ),
        compiler_params=pltpu.CompilerParams(
            dimension_semantics=("arbitrary",)),
    )(a, p, hn)
    return out[0, 0]


_SMALL_PATH_BYTES = 2 * 1024 * 1024   # per-array whole-VMEM-resident threshold


def triplet_loss_hard(anchor, positive, negative, margin=1.0, tile_b=None):
    """Pallas TPU triplet loss with hard negative mining (mining_type='hard')."""
    assert anchor.shape == positive.shape == negative.shape
    assert anchor.ndim == 2
    anchor = anchor.astype(jnp.float32)
    positive = positive.astype(jnp.float32)
    negative = negative.astype(jnp.float32)
    B, D = anchor.shape
    if tile_b is None and B * D * 4 <= _SMALL_PATH_BYTES:
        return _triplet_loss_small(anchor, positive, negative, margin)
    return _triplet_loss_tiled(anchor, positive, negative, margin, tile_b=tile_b)


def _reference_triplet_loss_hard(anchor, positive, negative, margin=1.0):
    """Plain-JAX reference mirroring the PyTorch module, for verification."""
    eps = 1e-6
    neg_dist = jnp.sqrt(jnp.sum((anchor - negative) ** 2, axis=1))
    idx = jnp.argmin(neg_dist)
    hn = negative[idx][None, :]
    d_ap = jnp.sqrt(jnp.sum((anchor - positive + eps) ** 2, axis=1))
    d_an = jnp.sqrt(jnp.sum((anchor - hn + eps) ** 2, axis=1))
    return jnp.mean(jnp.maximum(d_ap - d_an + margin, 0.0))


if __name__ == "__main__":
    key = jax.random.PRNGKey(0)
    k1, k2, k3, k4, k5, k6 = jax.random.split(key, 6)

    # --- small path (grid=1 fused kernel): B=8, D=32 embedding batch ---
    B, D = 8, 32
    a = jax.random.normal(k1, (B, D), dtype=jnp.float32)
    p = jax.random.normal(k2, (B, D), dtype=jnp.float32)
    n = jax.random.normal(k3, (B, D), dtype=jnp.float32)
    loss_small = jax.block_until_ready(triplet_loss_hard(a, p, n, margin=1.0))
    ref_small = _reference_triplet_loss_hard(a, p, n, margin=1.0)
    assert jnp.allclose(loss_small, ref_small, atol=1e-5, rtol=1e-5), (
        loss_small, ref_small)

    # --- tiled two-pass path (forced tile to exercise grid + padding mask) ---
    B2, D2 = 200, 256   # not a multiple of the tile -> exercises masking
    a2 = jax.random.normal(k4, (B2, D2), dtype=jnp.float32)
    p2 = jax.random.normal(k5, (B2, D2), dtype=jnp.float32)
    n2 = jax.random.normal(k6, (B2, D2), dtype=jnp.float32)
    loss_tiled = jax.block_until_ready(
        triplet_loss_hard(a2, p2, n2, margin=1.0, tile_b=64))
    ref_tiled = _reference_triplet_loss_hard(a2, p2, n2, margin=1.0)
    assert jnp.allclose(loss_tiled, ref_tiled, atol=1e-4, rtol=1e-4), (
        loss_tiled, ref_tiled)

    print("KERNEL_OK")
</pallas_src>

<mosaic_0001>
module attributes {stable_mosaic.version = 11 : i64} {
  func.func @_triplet_small_kernel(%arg0: memref<8x32xf32, #tpu.memory_space<vmem>>, %arg1: memref<8x32xf32, #tpu.memory_space<vmem>>, %arg2: memref<8x32xf32, #tpu.memory_space<vmem>>, %arg3: memref<1x1xf32, #tpu.memory_space<smem>>) attributes {dimension_semantics = [], scalar_prefetch = 0 : i64, scratch_operands = 0 : i64, tpu.core_type = #tpu.core_type<tc>} {
    %c0 = arith.constant 0 : index
    %c0_0 = arith.constant 0 : index
    %0 = vector.load %arg0[%c0, %c0_0] : memref<8x32xf32, #tpu.memory_space<vmem>>, vector<8x32xf32>
    %c0_1 = arith.constant 0 : index
    %c0_2 = arith.constant 0 : index
    %1 = vector.load %arg1[%c0_1, %c0_2] : memref<8x32xf32, #tpu.memory_space<vmem>>, vector<8x32xf32>
    %c0_3 = arith.constant 0 : index
    %c0_4 = arith.constant 0 : index
    %2 = vector.load %arg2[%c0_3, %c0_4] : memref<8x32xf32, #tpu.memory_space<vmem>>, vector<8x32xf32>
    %3 = arith.subf %0, %2 : vector<8x32xf32>
    %4 = arith.mulf %3, %3 : vector<8x32xf32>
    %cst = arith.constant dense<0.000000e+00> : vector<8xf32>
    %5 = vector.multi_reduction <add>, %4, %cst [1] : vector<8x32xf32> to vector<8xf32>
    %6 = vector.shape_cast %5 : vector<8xf32> to vector<8x1xf32>
    %7 = tpu.iota {dimensions = array<i32: 0>} : vector<8x1xi32>
    %8 = vector.shape_cast %6 : vector<8x1xf32> to vector<1x8x1xf32>
    %cst_5 = arith.constant dense<0x7F800000> : vector<1xf32>
    %9 = vector.multi_reduction <minimumf>, %8, %cst_5 [1, 2] : vector<1x8x1xf32> to vector<1xf32>
    %10 = vector.shape_cast %9 : vector<1xf32> to vector<1x1x1xf32>
    %11 = vector.extract %10[0, 0, 0] : f32 from vector<1x1x1xf32>
    %12 = vector.broadcast %11 : f32 to vector<8x1xf32>
    %13 = arith.cmpf oeq, %6, %12 : vector<8x1xf32>
    %c1073741824_i32 = arith.constant 1073741824 : i32
    %14 = vector.broadcast %c1073741824_i32 : i32 to vector<8x1xi32>
    %15 = arith.select %13, %7, %14 : vector<8x1xi1>, vector<8x1xi32>
    %16 = vector.shape_cast %15 : vector<8x1xi32> to vector<1x8x1xi32>
    %cst_6 = arith.constant dense<2147483647> : vector<1xi32>
    %17 = vector.multi_reduction <minsi>, %16, %cst_6 [1, 2] : vector<1x8x1xi32> to vector<1xi32>
    %18 = vector.shape_cast %17 : vector<1xi32> to vector<1x1x1xi32>
    %19 = vector.extract %18[0, 0, 0] : i32 from vector<1x1x1xi32>
    %20 = arith.index_cast %19 : i32 to index
    %c0_7 = arith.constant 0 : index
    %21 = vector.load %arg2[%20, %c0_7] : memref<8x32xf32, #tpu.memory_space<vmem>>, vector<1x32xf32>
    %22 = arith.subf %0, %1 : vector<8x32xf32>
    %cst_8 = arith.constant 9.99999997E-7 : f32
    %23 = vector.broadcast %cst_8 : f32 to vector<8x32xf32>
    %24 = arith.addf %22, %23 : vector<8x32xf32>
    %25 = arith.mulf %24, %24 : vector<8x32xf32>
    %cst_9 = arith.constant dense<0.000000e+00> : vector<8xf32>
    %26 = vector.multi_reduction <add>, %25, %cst_9 [1] : vector<8x32xf32> to vector<8xf32>
    %27 = vector.shape_cast %26 : vector<8xf32> to vector<8x1xf32>
    %28 = math.sqrt %27 : vector<8x1xf32>
    %29 = vector.broadcast %21 : vector<1x32xf32> to vector<8x32xf32>
    %30 = arith.subf %0, %29 : vector<8x32xf32>
    %cst_10 = arith.constant 9.99999997E-7 : f32
    %31 = vector.broadcast %cst_10 : f32 to vector<8x32xf32>
    %32 = arith.addf %30, %31 : vector<8x32xf32>
    %33 = arith.mulf %32, %32 : vector<8x32xf32>
    %cst_11 = arith.constant dense<0.000000e+00> : vector<8xf32>
    %34 = vector.multi_reduction <add>, %33, %cst_11 [1] : vector<8x32xf32> to vector<8xf32>
    %35 = vector.shape_cast %34 : vector<8xf32> to vector<8x1xf32>
    %36 = math.sqrt %35 : vector<8x1xf32>
    %37 = arith.subf %28, %36 : vector<8x1xf32>
    %cst_12 = arith.constant 1.000000e+00 : f32
    %38 = vector.broadcast %cst_12 : f32 to vector<8x1xf32>
    %39 = arith.addf %37, %38 : vector<8x1xf32>
    %cst_13 = arith.constant 0.000000e+00 : f32
    %40 = vector.broadcast %cst_13 : f32 to vector<8x1xf32>
    %41 = arith.maximumf %39, %40 : vector<8x1xf32>
    %42 = vector.shape_cast %41 : vector<8x1xf32> to vector<1x8x1xf32>
    %cst_14 = arith.constant dense<0.000000e+00> : vector<1xf32>
    %43 = vector.multi_reduction <add>, %42, %cst_14 [1, 2] : vector<1x8x1xf32> to vector<1xf32>
    %44 = vector.shape_cast %43 : vector<1xf32> to vector<1x1x1xf32>
    %45 = vector.extract %44[0, 0, 0] : f32 from vector<1x1x1xf32>
    %cst_15 = arith.constant 8.000000e+00 : f32
    %46 = arith.divf %45, %cst_15 : f32
    %c0_16 = arith.constant 0 : index
    %c0_17 = arith.constant 0 : index
    %47 = memref.load %arg3[%c0_16, %c0_17] : memref<1x1xf32, #tpu.memory_space<smem>>
    memref.store %46, %arg3[%c0_16, %c0_17] : memref<1x1xf32, #tpu.memory_space<smem>>
    return
  }
}

</mosaic_0001>

<bundles_post_ra>
// kernel: tpu_custom_call.1
= control target key start
LH: loop header
LB: loop body
LE: loop exit
PB: predicated region body
PF: predicated region fallthrough
CT: control target
= control target key end

     0   :  { %8 = vsyncpa [#allocation3], 0  ;;  %s319_s0 = inlined_call_operand.hbm [shape: f32[8,32], index: 0, kind: input, shape index: {}]   ;;  %s320_s1 = inlined_call_operand.hbm [shape: f32[8,32], index: 1, kind: input, shape index: {}]   ;;  %s321_s2 = inlined_call_operand.hbm [shape: f32[8,32], index: 2, kind: input, shape index: {}]   ;;  %s322_s3 = inlined_call_operand.hbm [shape: f32[1,1], index: 3, kind: output, shape index: {}]  }
   0x1   :  { %9 = vsyncpa [#allocation6], 0  ;;  %s27_s14 = sshll.u32 %s320_s1, 4  ;;  %s28_s14 = int_to_ptr.hbm [resolvable:$true] %s27_s14 }
   0x2   :  { %10 = vsyncpa [#allocation4], 0  ;;  %s279_s15 = smov [#allocation5]   ;;  %s16_s19 = sshll.u32 %s319_s0, 4  ;;  %s17_s19 = int_to_ptr.hbm [resolvable:$true] %s16_s19 }
   0x3   :  { %s29_s16 = sshll.u32 %s279_s15, 4  ;;  %s280_s20 = smov [#allocation2]   ;;  %s30_s16 = int_to_ptr.vmem [resolvable:$true] %s29_s16 }
   0x4   :  { %32 = dma.hbm_to_vmem [thread:$0]  %s28_s14, 128, %s30_s16, [#allocation6]  }
   0x5   :  { %s18_s21 = sshll.u32 %s280_s20, 4  ;;  %s38_s24 = sshll.u32 %s321_s2, 4  ;;  %s19_s21 = int_to_ptr.vmem [resolvable:$true] %s18_s21  ;;  %s39_s24 = int_to_ptr.hbm [resolvable:$true] %s38_s24 }
   0x6   :  { %21 = dma.hbm_to_vmem [thread:$0]  %s17_s19, 128, %s19_s21, [#allocation3]  }
   0x7   :  { %s281_s1 = smov [#allocation7]  }
   0x8   :  { %s40_s25 = sshll.u32 %s281_s1, 4  ;;  %s41_s25 = int_to_ptr.vmem [resolvable:$true] %s40_s25 }
   0x9   :  { %43 = dma.hbm_to_vmem [thread:$0]  %s39_s24, 128, %s41_s25, [#allocation6]  }
   0xa   :  { %273 = dma.done.wait [#allocation3], 128  }
   0xb   :  { %274 = vsyncadd [#allocation3], 4294967168 }
   0xc   :  { %275 = dma.done.wait [#allocation6], 256  }
   0xd   :  { %276 = vsyncadd [#allocation6], 4294967040  ;;  %v56_v0 = vld [vmem:[#allocation2] sm:$0xff]  ;;  %v58_v1 = vld [vmem:[#allocation7] sm:$0xff]  ;;  %vm61_vm0 = vcmask 261120   ;;  %v65_v17 = vlaneseq  ;;  %vm129_vm9 = vcmask 7168  }
   0xe   :  { %v59_v2 = vsub.f32 %v56_v0, %v58_v1  ;;  %v57_v12 = vld [vmem:[#allocation5] sm:$0xff]  ;;  %v282_v58 = vmov 8.0   ;;  %s156_s29 = sshll.u32 %s322_s3, 4  ;;  %s283_s6 = smov [#allocation8]   ;;  %s157_s29 = int_to_ptr.hbm [resolvable:$true] %s156_s29 }
   0xf   :  { %v89_v13 = vsub.f32 %v56_v0, %v57_v12  ;;  %v66_v18 = vshrl.u32 %v65_v17, 7 }
  0x10   :  { %v60_v3 = vmul.f32 %v59_v2, %v59_v2 }
  0x11   :  { %v90_v14 = vadd.f32 1e-06, %v89_v13 }
  0x12   :  { %v62_v4 = vsel %vm61_vm0, %v60_v3, 0.0 }
  0x13   :  { %63 = vadd.xlane.f32.xlu0 %v62_v4  ;;  %v91_v15 = vmul.f32 %v90_v14, %v90_v14 }
  0x15   :  { %v92_v16 = vsel %vm61_vm0, %v91_v15, 0.0 }
  0x1b   :  { %93 = vadd.xlane.f32.xlu0 %v92_v16 }
  0x86   :  { %v64_v5 = vpop.xlane.xlu0 %63 }
  0x87   :  { %v67_v6 = vrot.slane %v64_v5, 4 }
  0x89   :  { %v68_v7 = vmin.f32 %v64_v5, %v67_v6 }
  0x8b   :  { %v69_v8 = vrot.slane %v68_v7, 2 }
  0x8d   :  { %v70_v9 = vmin.f32 %v68_v7, %v69_v8 }
  0x8e   :  { %v94_v32 = vpop.xlane.xlu0 %93 }
  0x8f   :  { %v71_v10 = vrot.slane %v70_v9, 1  ;;  %183 = vrsqrt.f32 %v94_v32  ;;  %vm102_vm5 = vcmp.eq.f32.partialorder %v94_v32, inf  ;;  %v105_v47 = vand.u32 2147483648, %v94_v32 }
  0x90   :  { %vm104_vm6 = vcmp.eq.f32.partialorder %v94_v32, 0.0 }
  0x91   :  { %v72_v11 = vmin.f32 %v70_v9, %v71_v10 }
  0x93   :  { %169 = vpush %v72_v11 }
  0x95   :  { %v184_v33 = vpop.eup %183 }
  0x96   :  { %v96_v34 = vmul.f32 %v184_v33, %v94_v32 }
  0x98   :  { %v97_v35 = vmul.f32 %v184_v33, %v96_v34 }
  0x9a   :  { %v98_v37 = vmul.f32 0.5, %v97_v35 }
  0x9c   :  { %v99_v38 = vsub.f32 1.5, %v98_v37 }
  0x9e   :  { %v100_v41 = vmul.f32 %v184_v33, %v99_v38 }
  0xa0   :  { %v101_v44 = vmul.f32 %v100_v41, %v94_v32 }
  0xa2   :  { %v103_v48 = vsel %vm102_vm5, %v94_v32, %v101_v44 }
  0xa3   :  { %v106_v52 = vsel %vm104_vm6, %v105_v47, %v103_v48 }
  0xc4   :  { %s170_s0 = spop %169 }
  0xc5   :  { %v74_v19 = vstv %s170_s0 }
  0xc6   :  { %vm75_vm1 = vcmp.eq.f32.partialorder %v64_v5, %v74_v19 }
  0xc7   :  { %v76_v20 = vsel %vm75_vm1, %v66_v18, 1073741824 }
  0xc8   :  { %v77_v21 = vrot.slane %v76_v20, 4 }
  0xca   :  { %vm78_vm2 = vcmp.lt.s32.totalorder %v76_v20, %v77_v21 }
  0xcb   :  { %v79_v22 = vsel %vm78_vm2, %v76_v20, %v77_v21 }
  0xcc   :  { %v80_v23 = vrot.slane %v79_v22, 2 }
  0xce   :  { %vm81_vm3 = vcmp.lt.s32.totalorder %v79_v22, %v80_v23 }
  0xcf   :  { %v82_v24 = vsel %vm81_vm3, %v79_v22, %v80_v23 }
  0xd0   :  { %v83_v25 = vrot.slane %v82_v24, 1 }
  0xd2   :  { %vm84_vm4 = vcmp.lt.s32.totalorder %v82_v24, %v83_v25 }
  0xd3   :  { %v85_v26 = vsel %vm84_vm4, %v82_v24, %v83_v25 }
  0xd4   :  { %171 = vpush %v85_v26 }
 0x105   :  { %s172_s2 = spop %171 }
 0x106   :  { %s87_s26 = scalar_lea.vmem [#allocation7], %s172_s2 }
 0x107   :  { %v182_v27 = vld [vmem:[%s87_s26] ss:$0 sm:$0xff] }
 0x108   :  { %v108_v28 = vsub.f32 %v56_v0, %v182_v27 }
 0x10a   :  { %v109_v29 = vadd.f32 1e-06, %v108_v28 }
 0x10c   :  { %v110_v30 = vmul.f32 %v109_v29, %v109_v29 }
 0x10e   :  { %v111_v31 = vsel %vm61_vm0, %v110_v30, 0.0 }
 0x10f   :  { %112 = vadd.xlane.f32.xlu1 %v111_v31 }
 0x182   :  { %v113_v36 = vpop.xlane.xlu1 %112 }
 0x183   :  { %185 = vrsqrt.f32 %v113_v36  ;;  %vm121_vm7 = vcmp.eq.f32.partialorder %v113_v36, inf  ;;  %v124_v50 = vand.u32 2147483648, %v113_v36  ;;  %vm123_vm8 = vcmp.eq.f32.partialorder %v113_v36, 0.0 }
 0x184   :  { %187 = vrcp.f32 %v282_v58 }
 0x189   :  { %v186_v39 = vpop.eup %185 }
 0x18a   :  { %v115_v40 = vmul.f32 %v186_v39, %v113_v36  ;;  %v188_v59 = vpop.eup %187 }
 0x18b   :  { %v141_v60 = vmul.f32 8.0, %v188_v59  ;;  %vm145_vm10 = vweird.f32 %v188_v59 }
 0x18c   :  { %v116_v42 = vmul.f32 %v186_v39, %v115_v40 }
 0x18d   :  { %v142_v61 = vsub.f32 1.0, %v141_v60 }
 0x18e   :  { %v117_v43 = vmul.f32 0.5, %v116_v42 }
 0x18f   :  { %v143_v1 = vmul.f32 %v188_v59, %v142_v61 }
 0x190   :  { %v118_v45 = vsub.f32 1.5, %v117_v43 }
 0x191   :  { %v144_v4 = vadd.f32 %v188_v59, %v143_v1 }
 0x192   :  { %v119_v46 = vmul.f32 %v186_v39, %v118_v45 }
 0x193   :  { %v146_v7 = vsel %vm145_vm10, %v188_v59, %v144_v4 }
 0x194   :  { %v120_v49 = vmul.f32 %v119_v46, %v113_v36 }
 0x196   :  { %v122_v51 = vsel %vm121_vm7, %v113_v36, %v120_v49 }
 0x197   :  { %v125_v53 = vsel %vm123_vm8, %v124_v50, %v122_v51 }
 0x198   :  { %v126_v54 = vsub.f32 %v106_v52, %v125_v53 }
 0x19a   :  { %v127_v55 = vadd.f32 1.0, %v126_v54 }
 0x19c   :  { %v128_v56 = vmax.f32 %v127_v55, 0.0 }
 0x19e   :  { %v130_v57 = vsel %vm129_vm9, %v128_v56, 0.0 }
 0x19f   :  { %131 = vadd.xlane.f32.xlu1 %v130_v57 }
 0x212   :  { %v132_v62 = vpop.xlane.xlu1 %131 }
 0x213   :  { %v133_v63 = vrot.slane %v132_v62, 4 }
 0x215   :  { %v134_v0 = vadd.f32 %v133_v63, %v132_v62 }
 0x217   :  { %v135_v2 = vrot.slane %v134_v0, 2 }
 0x219   :  { %v136_v3 = vadd.f32 %v135_v2, %v134_v0 }
 0x21b   :  { %v137_v5 = vrot.slane %v136_v3, 1 }
 0x21d   :  { %v138_v6 = vadd.f32 %v137_v5, %v136_v3 }
 0x21f   :  { %173 = vpush %v138_v6 }
 0x220   :  { %175 = vpush %v146_v7 }
 0x250   :  { %s174_s30 = spop %173 }
 0x251   :  { %s176_s4 = spop %175 }
 0x252   :  { %s148_s5 = smul.f32 %s176_s4, %s174_s30 }
 0x254   :  { %150 = sst [smem:[#allocation8]] %s148_s5 }
 0x255   :  { %159 = dma.smem_to_hbm %s283_s6, 16, %s157_s29, [#allocation4]  }
 0x256   :  { %277 = dma.done.wait [#allocation4], 16  }
 0x257   :  { %278 = vsyncadd [#allocation4], 4294967280 }
 0x258   :  { %164 = sfence }
 0x259   :  { %165 = vsyncpa [#allocation3], 1 }
 0x25a   :  { %166 = vsyncpa [#allocation6], 1 }
 0x25b   :  { %167 = vsyncpa [#allocation4], 1 }

</bundles_post_ra>
